<compile_context>
chip_gen: v5e
topology: v5e:2x2
jax: 0.10.0
libtpu: 0.0.40
codegen_flags: <defaults>
</compile_context>

<pallas_src>
import functools

import jax
import jax.numpy as jnp
from jax.experimental import pallas as pl
from jax.experimental.pallas import tpu as pltpu

_LANE = 128  # lane width (last dim) — only output/lane dims are padded to this


def _round_up(x, m):
    return (x + m - 1) // m * m


def _mlp_kernel(x_ref, w1_ref, b1_ref, w2_ref, b2_ref, w3_ref, b3_ref,
                logits_ref, act_ref, *, num_actions):
    # Fused 3-layer MLP + greedy-argmax epilogue on one (TM, num_inputs) tile.
    x = x_ref[...].astype(jnp.bfloat16)  # f32 obs -> bf16 inside the kernel

    h1 = jnp.dot(x, w1_ref[...], preferred_element_type=jnp.float32) + b1_ref[...]
    h1 = jnp.maximum(h1, 0.0).astype(jnp.bfloat16)

    h2 = jnp.dot(h1, w2_ref[...], preferred_element_type=jnp.float32) + b2_ref[...]
    h2 = jnp.maximum(h2, 0.0).astype(jnp.bfloat16)

    logits = jnp.dot(h2, w3_ref[...], preferred_element_type=jnp.float32) + b3_ref[...]

    # Lane-dense bf16 store of the padded logits (half the bytes of f32).
    logits_ref[...] = logits.astype(logits_ref.dtype)

    # Fused greedy-action epilogue: mask padded action lanes (cols >= num_actions)
    # to -inf, then take the first index attaining the row max (torch.argmax).
    col = jax.lax.broadcasted_iota(jnp.int32, logits.shape, 1)
    masked = jnp.where(col < num_actions, logits, jnp.finfo(jnp.float32).min)
    row_max = jnp.max(masked, axis=-1, keepdims=True)
    idx_f = jnp.where(masked == row_max, col.astype(jnp.float32),
                      jnp.float32(logits.shape[-1]))
    act_ref[...] = jnp.min(idx_f, axis=-1, keepdims=True).astype(jnp.int32)


def _policy_call(state, params, num_actions, tm):
    """Runs the fused kernel. Returns (padded bf16 logits (B, a_p), int32 actions (B, 1))."""
    w1, b1, w2, b2, w3, b3 = params  # packed: lane dims padded to 128, weights bf16
    B, d_in = state.shape
    assert w1.shape[0] == d_in, "state feature dim must match packed w1"
    h_p = w1.shape[1]
    a_p = w3.shape[1]

    # Batch tile: big (default 512) for HBM-roofline amortization, but capped at
    # ~ceil(B/2) so the grid has >= 2 steps (both v7x TensorCores busy) whenever
    # the batch allows. Tiny batches use one full-dim block (no padding copy).
    tm = max(16, (int(tm) // 16) * 16)
    if B <= 16:
        tm_eff = B                                   # single block == full array dims
    else:
        tm_eff = min(tm, _round_up(-(-B // 2), 16))  # multiple of 16, always <= B
    grid = (pl.cdiv(B, tm_eff),)                     # Pallas masks the partial last block

    flops = 2 * B * (d_in * h_p + h_p * h_p + h_p * a_p)
    resident_bytes = ((w1.size + w2.size + w3.size) * 2        # bf16 weights (DMA'd once)
                      + (b1.size + b2.size + b3.size) * 4)     # f32 biases
    bytes_accessed = (B * d_in * 4        # f32 state in (unpadded)
                      + resident_bytes
                      + B * a_p * 2       # bf16 logits out
                      + B * 4)            # int32 greedy actions out

    # Scoped-VMEM budget: constant-index-map inputs still get 2 pipeline buffers,
    # so account for 2x residents + double-buffered batch tiles, with headroom,
    # capped below v7x's 64 MiB physical VMEM. (Tiny nets resolve to the 32 MiB floor.)
    vmem_est = 2 * resident_bytes + 2 * tm_eff * (d_in * 4 + a_p * 2 + 4)
    vmem_limit = int(min(max(2 * vmem_est + (2 << 20), 32 << 20), 60 << 20))

    logits_pad, actions = pl.pallas_call(
        functools.partial(_mlp_kernel, num_actions=num_actions),
        out_shape=(
            jax.ShapeDtypeStruct((B, a_p), jnp.bfloat16),
            jax.ShapeDtypeStruct((B, 1), jnp.int32),
        ),
        grid=grid,
        in_specs=[
            pl.BlockSpec((tm_eff, d_in), lambda i: (i, 0)),  # state tile (pipelined, unpadded K)
            pl.BlockSpec((d_in, h_p), lambda i: (0, 0)),     # w1 (VMEM-resident)
            pl.BlockSpec((1, h_p), lambda i: (0, 0)),        # b1
            pl.BlockSpec((h_p, h_p), lambda i: (0, 0)),      # w2
            pl.BlockSpec((1, h_p), lambda i: (0, 0)),        # b2
            pl.BlockSpec((h_p, a_p), lambda i: (0, 0)),      # w3
            pl.BlockSpec((1, a_p), lambda i: (0, 0)),        # b3
        ],
        out_specs=(
            pl.BlockSpec((tm_eff, a_p), lambda i: (i, 0)),   # bf16 logits (lane-dense)
            pl.BlockSpec((tm_eff, 1), lambda i: (i, 0)),     # int32 greedy action
        ),
        compiler_params=pltpu.CompilerParams(
            dimension_semantics=("parallel",),               # megacore sharding on v7x
            vmem_limit_bytes=vmem_limit),
        cost_estimate=pl.CostEstimate(
            flops=flops, transcendentals=0, bytes_accessed=bytes_accessed),
    )(state, w1, b1, w2, b2, w3, b3)
    return logits_pad, actions


def categorical_policy_forward(state, params, num_actions, *, tm=512):
    """CateoricalPolicy.forward: action logits (B, num_actions), f32."""
    logits_pad, _ = _policy_call(state, params, num_actions, tm)
    return logits_pad[:, :num_actions].astype(jnp.float32)


def categorical_policy_act(state, params, num_actions, *, tm=512):
    """CateoricalPolicy.act: greedy action indices (B, 1), int32 (fused argmax)."""
    _, actions = _policy_call(state, params, num_actions, tm)
    return actions


def init_params(key, num_inputs, num_actions, hidden_dim):
    """Deterministic init mimicking torch.nn.Linear default (uniform +/- 1/sqrt(fan_in)).
    Returns *unpadded* f32 params with weights already transposed to (in, out)."""
    def linear(k, fan_in, fan_out):
        kw, kb = jax.random.split(k)
        bound = 1.0 / jnp.sqrt(fan_in)
        w = jax.random.uniform(kw, (fan_in, fan_out), jnp.float32, -bound, bound)
        b = jax.random.uniform(kb, (1, fan_out), jnp.float32, -bound, bound)
        return w, b

    k1, k2, k3 = jax.random.split(key, 3)
    w1, b1 = linear(k1, num_inputs, hidden_dim)
    w2, b2 = linear(k2, hidden_dim, hidden_dim)
    w3, b3 = linear(k3, hidden_dim, num_actions)
    return (w1, b1, w2, b2, w3, b3)


def pack_params(raw_params):
    """One-time packing: pad only lane (output) dims to 128 and cast weights to bf16
    (biases stay f32). The first layer's contraction dim (num_inputs) is left
    unpadded. Zero padding is exact: padded hidden units get zero pre-activation
    and zero outgoing weights; padded action columns produce zero logits that the
    wrapper slices off (and the in-kernel argmax masks to -inf)."""
    w1, b1, w2, b2, w3, b3 = raw_params
    d_in, hidden = w1.shape
    num_actions = w3.shape[1]
    h_p = _round_up(hidden, _LANE)
    a_p = _round_up(num_actions, _LANE)

    def pad_w(w, rows, cols):
        out = jnp.zeros((rows, cols), jnp.bfloat16)
        return out.at[: w.shape[0], : w.shape[1]].set(w.astype(jnp.bfloat16))

    def pad_b(b, cols):
        out = jnp.zeros((1, cols), jnp.float32)
        return out.at[:, : b.shape[1]].set(b.astype(jnp.float32))

    return (pad_w(w1, d_in, h_p), pad_b(b1, h_p),
            pad_w(w2, h_p, h_p), pad_b(b2, h_p),
            pad_w(w3, h_p, a_p), pad_b(b3, a_p))


def _reference_forward(state, raw_params):
    w1, b1, w2, b2, w3, b3 = raw_params
    h1 = jnp.maximum(state @ w1 + b1, 0.0)
    h2 = jnp.maximum(h1 @ w2 + b2, 0.0)
    return h2 @ w3 + b3


if __name__ == "__main__":
    B, num_inputs, num_actions, hidden_dim = 8, 16, 4, 32

    key = jax.random.PRNGKey(0)
    k_state, k_params = jax.random.split(key)
    state = jax.random.normal(k_state, (B, num_inputs), jnp.float32)
    raw_params = init_params(k_params, num_inputs, num_actions, hidden_dim)
    params = pack_params(raw_params)

    logits = categorical_policy_forward(state, params, num_actions)
    logits = jax.block_until_ready(logits)

    ref = _reference_forward(state, raw_params)  # f32 reference
    assert logits.shape == (B, num_actions)
    # bf16 weights/activations + bf16 logits store with f32 accumulation.
    assert jnp.allclose(logits, ref, atol=2e-2, rtol=2e-2), "mismatch vs reference"

    actions = jax.block_until_ready(categorical_policy_act(state, params, num_actions))
    assert actions.shape == (B, 1)
    assert bool(jnp.all((actions >= 0) & (actions < num_actions))), "action index out of range"

    # sample(): softmax / Categorical sampling stays thin JAX glue on the logits.
    # TODO(synk): add a logits-free sample() variant that also fuses softmax + Gumbel
    # sampling in-kernel so padded logits never hit HBM when only actions are needed.
    print("KERNEL_OK")
</pallas_src>

<mosaic_0001>
module attributes {stable_mosaic.version = 11 : i64} {
  func.func @_mlp_kernel(%arg0: i32, %arg1: memref<8x16xf32, #tpu.memory_space<vmem>>, %arg2: memref<16x128xbf16, #tpu.memory_space<vmem>>, %arg3: memref<1x128xf32, #tpu.memory_space<vmem>>, %arg4: memref<128x128xbf16, #tpu.memory_space<vmem>>, %arg5: memref<1x128xf32, #tpu.memory_space<vmem>>, %arg6: memref<128x128xbf16, #tpu.memory_space<vmem>>, %arg7: memref<1x128xf32, #tpu.memory_space<vmem>>, %arg8: memref<8x128xbf16, #tpu.memory_space<vmem>>, %arg9: memref<8x1xi32, #tpu.memory_space<vmem>>) attributes {dimension_semantics = [#tpu.dimension_semantics<parallel>], iteration_bounds = array<i64: 1>, scalar_prefetch = 0 : i64, scratch_operands = 0 : i64, tpu.core_type = #tpu.core_type<tc>, window_params = [{transform_indices = @transform_0, window_bounds = array<i64: 8, 16>}, {pipeline_mode = #tpu.pipeline_mode<synchronous>, transform_indices = @transform_1, window_bounds = array<i64: 16, 128>}, {pipeline_mode = #tpu.pipeline_mode<synchronous>, transform_indices = @transform_2, window_bounds = array<i64: 1, 128>}, {pipeline_mode = #tpu.pipeline_mode<synchronous>, transform_indices = @transform_3, window_bounds = array<i64: 128, 128>}, {pipeline_mode = #tpu.pipeline_mode<synchronous>, transform_indices = @transform_4, window_bounds = array<i64: 1, 128>}, {pipeline_mode = #tpu.pipeline_mode<synchronous>, transform_indices = @transform_5, window_bounds = array<i64: 128, 128>}, {pipeline_mode = #tpu.pipeline_mode<synchronous>, transform_indices = @transform_6, window_bounds = array<i64: 1, 128>}, {transform_indices = @transform_7, window_bounds = array<i64: 8, 128>}, {transform_indices = @transform_8, window_bounds = array<i64: 8, 1>}]} {
    %c0 = arith.constant 0 : index
    %c0_0 = arith.constant 0 : index
    %0 = vector.load %arg1[%c0, %c0_0] : memref<8x16xf32, #tpu.memory_space<vmem>>, vector<8x16xf32>
    %1 = arith.truncf %0 : vector<8x16xf32> to vector<8x16xbf16>
    %c0_1 = arith.constant 0 : index
    %c0_2 = arith.constant 0 : index
    %2 = vector.load %arg2[%c0_1, %c0_2] : memref<16x128xbf16, #tpu.memory_space<vmem>>, vector<16x128xbf16>
    %cst = arith.constant dense<0.000000e+00> : vector<8x128xf32>
    %3 = tpu.matmul %1, %2, %cst {dimension_numbers = #tpu.dot_dimension_numbers<[1], [0], [0], [1], [0, 0, 1, 1], [], []>} : vector<8x16xbf16>, vector<16x128xbf16>, vector<8x128xf32> -> vector<8x128xf32>
    %c0_3 = arith.constant 0 : index
    %c0_4 = arith.constant 0 : index
    %4 = vector.load %arg3[%c0_3, %c0_4] : memref<1x128xf32, #tpu.memory_space<vmem>>, vector<1x128xf32>
    %5 = vector.broadcast %4 : vector<1x128xf32> to vector<8x128xf32>
    %6 = arith.addf %3, %5 : vector<8x128xf32>
    %cst_5 = arith.constant 0.000000e+00 : f32
    %7 = vector.broadcast %cst_5 : f32 to vector<8x128xf32>
    %8 = arith.maximumf %6, %7 : vector<8x128xf32>
    %9 = arith.truncf %8 : vector<8x128xf32> to vector<8x128xbf16>
    %c0_6 = arith.constant 0 : index
    %c0_7 = arith.constant 0 : index
    %10 = vector.load %arg4[%c0_6, %c0_7] : memref<128x128xbf16, #tpu.memory_space<vmem>>, vector<128x128xbf16>
    %cst_8 = arith.constant dense<0.000000e+00> : vector<8x128xf32>
    %11 = tpu.matmul %9, %10, %cst_8 {dimension_numbers = #tpu.dot_dimension_numbers<[1], [0], [0], [1], [0, 0, 1, 1], [], []>} : vector<8x128xbf16>, vector<128x128xbf16>, vector<8x128xf32> -> vector<8x128xf32>
    %c0_9 = arith.constant 0 : index
    %c0_10 = arith.constant 0 : index
    %12 = vector.load %arg5[%c0_9, %c0_10] : memref<1x128xf32, #tpu.memory_space<vmem>>, vector<1x128xf32>
    %13 = vector.broadcast %12 : vector<1x128xf32> to vector<8x128xf32>
    %14 = arith.addf %11, %13 : vector<8x128xf32>
    %cst_11 = arith.constant 0.000000e+00 : f32
    %15 = vector.broadcast %cst_11 : f32 to vector<8x128xf32>
    %16 = arith.maximumf %14, %15 : vector<8x128xf32>
    %17 = arith.truncf %16 : vector<8x128xf32> to vector<8x128xbf16>
    %c0_12 = arith.constant 0 : index
    %c0_13 = arith.constant 0 : index
    %18 = vector.load %arg6[%c0_12, %c0_13] : memref<128x128xbf16, #tpu.memory_space<vmem>>, vector<128x128xbf16>
    %cst_14 = arith.constant dense<0.000000e+00> : vector<8x128xf32>
    %19 = tpu.matmul %17, %18, %cst_14 {dimension_numbers = #tpu.dot_dimension_numbers<[1], [0], [0], [1], [0, 0, 1, 1], [], []>} : vector<8x128xbf16>, vector<128x128xbf16>, vector<8x128xf32> -> vector<8x128xf32>
    %c0_15 = arith.constant 0 : index
    %c0_16 = arith.constant 0 : index
    %20 = vector.load %arg7[%c0_15, %c0_16] : memref<1x128xf32, #tpu.memory_space<vmem>>, vector<1x128xf32>
    %21 = vector.broadcast %20 : vector<1x128xf32> to vector<8x128xf32>
    %22 = arith.addf %19, %21 : vector<8x128xf32>
    %23 = arith.truncf %22 : vector<8x128xf32> to vector<8x128xbf16>
    %c0_17 = arith.constant 0 : index
    %c0_18 = arith.constant 0 : index
    %24 = vector.load %arg8[%c0_17, %c0_18] : memref<8x128xbf16, #tpu.memory_space<vmem>>, vector<8x128xbf16>
    tpu.vector_store %arg8[%c0_17, %c0_18], %23 {strides = array<i32>} : memref<8x128xbf16, #tpu.memory_space<vmem>>, vector<8x128xbf16>,
    %25 = tpu.iota {dimensions = array<i32: 1>} : vector<8x128xi32>
    %c4_i32 = arith.constant 4 : i32
    %26 = vector.broadcast %c4_i32 : i32 to vector<8x128xi32>
    %27 = arith.cmpi slt, %25, %26 : vector<8x128xi32>
    %cst_19 = arith.constant -3.40282347E+38 : f32
    %28 = vector.broadcast %cst_19 : f32 to vector<8x128xf32>
    %29 = arith.select %27, %22, %28 : vector<8x128xi1>, vector<8x128xf32>
    %cst_20 = arith.constant dense<0xFF800000> : vector<8xf32>
    %30 = vector.multi_reduction <maximumf>, %29, %cst_20 [1] : vector<8x128xf32> to vector<8xf32>
    %31 = vector.shape_cast %30 : vector<8xf32> to vector<8x1xf32>
    %32 = vector.broadcast %31 : vector<8x1xf32> to vector<8x128xf32>
    %33 = arith.cmpf oeq, %29, %32 : vector<8x128xf32>
    %34 = arith.sitofp %25 : vector<8x128xi32> to vector<8x128xf32>
    %cst_21 = arith.constant 1.280000e+02 : f32
    %35 = vector.broadcast %cst_21 : f32 to vector<8x128xf32>
    %36 = arith.select %33, %34, %35 : vector<8x128xi1>, vector<8x128xf32>
    %cst_22 = arith.constant dense<0x7F800000> : vector<8xf32>
    %37 = vector.multi_reduction <minimumf>, %36, %cst_22 [1] : vector<8x128xf32> to vector<8xf32>
    %38 = vector.shape_cast %37 : vector<8xf32> to vector<8x1xf32>
    %39 = arith.fptosi %38 : vector<8x1xf32> to vector<8x1xi32>
    %c0_23 = arith.constant 0 : index
    %c0_24 = arith.constant 0 : index
    %40 = vector.load %arg9[%c0_23, %c0_24] : memref<8x1xi32, #tpu.memory_space<vmem>>, vector<8x1xi32>
    tpu.vector_store %arg9[%c0_23, %c0_24], %39 {strides = array<i32>} : memref<8x1xi32, #tpu.memory_space<vmem>>, vector<8x1xi32>,
    return
  }
  func.func @transform_0(%arg0: i32) -> (i32, i32) {
    %c0_i32 = arith.constant 0 : i32
    %c0_i32_0 = arith.constant 0 : i32
    return %arg0, %c0_i32 : i32, i32
  }
  func.func @transform_1(%arg0: i32) -> (i32, i32) {
    %c0_i32 = arith.constant 0 : i32
    %c0_i32_0 = arith.constant 0 : i32
    %c0_i32_1 = arith.constant 0 : i32
    return %c0_i32, %c0_i32_0 : i32, i32
  }
  func.func @transform_2(%arg0: i32) -> (i32, i32) {
    %c0_i32 = arith.constant 0 : i32
    %c0_i32_0 = arith.constant 0 : i32
    %c0_i32_1 = arith.constant 0 : i32
    return %c0_i32, %c0_i32_0 : i32, i32
  }
  func.func @transform_3(%arg0: i32) -> (i32, i32) {
    %c0_i32 = arith.constant 0 : i32
    %c0_i32_0 = arith.constant 0 : i32
    %c0_i32_1 = arith.constant 0 : i32
    return %c0_i32, %c0_i32_0 : i32, i32
  }
  func.func @transform_4(%arg0: i32) -> (i32, i32) {
    %c0_i32 = arith.constant 0 : i32
    %c0_i32_0 = arith.constant 0 : i32
    %c0_i32_1 = arith.constant 0 : i32
    return %c0_i32, %c0_i32_0 : i32, i32
  }
  func.func @transform_5(%arg0: i32) -> (i32, i32) {
    %c0_i32 = arith.constant 0 : i32
    %c0_i32_0 = arith.constant 0 : i32
    %c0_i32_1 = arith.constant 0 : i32
    return %c0_i32, %c0_i32_0 : i32, i32
  }
  func.func @transform_6(%arg0: i32) -> (i32, i32) {
    %c0_i32 = arith.constant 0 : i32
    %c0_i32_0 = arith.constant 0 : i32
    %c0_i32_1 = arith.constant 0 : i32
    return %c0_i32, %c0_i32_0 : i32, i32
  }
  func.func @transform_7(%arg0: i32) -> (i32, i32) {
    %c0_i32 = arith.constant 0 : i32
    %c0_i32_0 = arith.constant 0 : i32
    return %arg0, %c0_i32 : i32, i32
  }
  func.func @transform_8(%arg0: i32) -> (i32, i32) {
    %c0_i32 = arith.constant 0 : i32
    %c0_i32_0 = arith.constant 0 : i32
    return %arg0, %c0_i32 : i32, i32
  }
}

</mosaic_0001>

<bundles_post_ra>
// kernel: tpu_custom_call.1
= control target key start
LH: loop header
LB: loop body
LE: loop exit
PB: predicated region body
PF: predicated region fallthrough
CT: control target
= control target key end

     0   :  { %14 = vsyncpa [#allocation3], 0  ;;  %s635_s0 = inlined_call_operand.hbm [shape: f32[8,16], index: 0, kind: input, shape index: {}]   ;;  %s636_s1 = inlined_call_operand.hbm [shape: bf16[16,128], index: 1, kind: input, shape index: {}]   ;;  %s637_s2 = inlined_call_operand.vmem [shape: f32[1,128], index: 2, kind: input, shape index: {}]   ;;  %s638_s3 = inlined_call_operand.hbm [shape: bf16[128,128], index: 3, kind: input, shape index: {}]   ;;  %s639_s4 = inlined_call_operand.vmem [shape: f32[1,128], index: 4, kind: input, shape index: {}]   ;;  %s640_s5 = inlined_call_operand.hbm [shape: bf16[128,128], index: 5, kind: input, shape index: {}]   ;;  %s641_s6 = inlined_call_operand.vmem [shape: f32[1,128], index: 6, kind: input, shape index: {}]   ;;  %s642_s7 = inlined_call_operand.hbm [shape: bf16[8,128], index: 7, kind: output, shape index: {0}]   ;;  %s643_s8 = inlined_call_operand.vmem [shape: s32[8,1], index: 8, kind: output, shape index: {1}]  }
   0x1   :  { %15 = vsyncpa [#allocation6], 0 }
   0x2   :  { %16 = vsyncpa [#allocation9], 0  ;;  %s33_s29 = sshll.u32 %s636_s1, 4  ;;  %s34_s29 = int_to_ptr.hbm [resolvable:$true] %s33_s29 }
   0x3   :  { %17 = vsyncpa [#allocation4], 0  ;;  %s556_s30 = smov [#allocation5]   ;;  %s23_s12 = sshll.u32 %s635_s0, 4  ;;  %s24_s12 = int_to_ptr.hbm [resolvable:$true] %s23_s12 }
   0x4   :  { %s35_s9 = sshll.u32 %s556_s30, 4  ;;  %s557_s13 = smov 64   ;;  %s36_s9 = int_to_ptr.vmem [resolvable:$true] %s35_s9 }
   0x5   :  { %s558_s14 = smov 4   ;;  %s559_s15 = smov [#allocation2]  }
   0x6   :  { %41 = dma.hbm_to_vmem [thread:$0]  %s34_s29, 128, %s36_s9, [#allocation6], %s557_s13, %s557_s13, %s558_s14  }
   0x7   :  { %s25_s16 = sshll.u32 %s559_s15, 4  ;;  %s48_s19 = sshll.u32 %s638_s3, 4  ;;  %s26_s16 = int_to_ptr.vmem [resolvable:$true] %s25_s16  ;;  %s49_s19 = int_to_ptr.hbm [resolvable:$true] %s48_s19 }
   0x8   :  { %28 = dma.hbm_to_vmem [thread:$0]  %s24_s12, 128, %s26_s16, [#allocation3]  }
   0x9   :  { %s63_s21 = sshll.u32 %s640_s5, 4  ;;  %s560_s22 = smov [#allocation7]   ;;  %s64_s21 = int_to_ptr.hbm [resolvable:$true] %s63_s21 }
   0xa   :  { %s50_s23 = sshll.u32 %s560_s22, 4  ;;  %s561_s0 = smov [#allocation8]   ;;  %s51_s23 = int_to_ptr.vmem [resolvable:$true] %s50_s23 }
   0xb   :  { %56 = dma.hbm_to_vmem [thread:$0]  %s49_s19, 1024, %s51_s23, [#allocation6], %s557_s13, %s557_s13, %s558_s14  }
   0xc   :  { %s65_s24 = sshll.u32 %s561_s0, 4  ;;  %s66_s24 = int_to_ptr.vmem [resolvable:$true] %s65_s24 }
   0xd   :  { %71 = dma.hbm_to_vmem [thread:$0]  %s64_s21, 1024, %s66_s24, [#allocation9], %s557_s13, %s557_s13, %s558_s14  }
   0xe   :  { %548 = dma.done.wait [#allocation3], 128  }
   0xf   :  { %549 = vsyncadd [#allocation3], 4294967168 }
  0x10   :  { %550 = dma.done.wait [#allocation6], 1152  }
  0x11   :  { %551 = vsyncadd [#allocation6], 4294966144 }
  0x12   :  { %552 = dma.done.wait [#allocation9], 1024  }
  0x13   :  { %553 = vsyncadd [#allocation9], 4294966272  ;;  %v396_v0 = vld [vmem:[#allocation5] sm:$0xff]  ;;  %v91_v1 = vld [vmem:[#allocation2] sm:$0xff]  ;;  %vm105_vm0 = vcmask 130048   ;;  %v290_v31 = vlaneseq  ;;  %s311_s9 = sshll.u32 %s642_s7, 4  ;;  %s312_s9 = int_to_ptr.hbm [resolvable:$true] %s311_s9 }
  0x14   :  { %v404_v2 = vld [vmem:[#allocation7 + $0x38] sm:$0xff]  ;;  %v92_v3 = vpack.c.bf16 %v91_v1, %v91_v1  ;;  %116 = vmatpush.bf16.msra.mxu0 %v396_v0  ;;  %v403_v4 = vld [vmem:[#allocation7 + $0x30] sm:$0xff]  ;;  %v402_v5 = vld [vmem:[#allocation7 + $0x28] sm:$0xff]  ;;  %vm302_vm4 = vcmask 7168  }
  0x15   :  { %192 = vmatpush.bf16.msra.mxu1 %v404_v2  ;;  %v401_v6 = vld [vmem:[#allocation7 + $0x20] sm:$0xff]  ;;  %v400_v7 = vld [vmem:[#allocation7 + $0x18] sm:$0xff]  ;;  %v399_v8 = vld [vmem:[#allocation7 + $0x10] sm:$0xff]  ;;  %v291_v32 = vand.u32 127, %v290_v31 }
  0x16   :  { %v398_v9 = vld [vmem:[#allocation7 + $0x8] sm:$0xff]  ;;  %v397_v10 = vld [vmem:[#allocation7] sm:$0xff]  ;;  %v412_v11 = vld [vmem:[#allocation8 + $0x38] sm:$0xff] }
  0x17   :  { %331 = vmatmul.msk.bf16.vlgmr.msra.gmra.mxu0 %vm105_vm0, %v92_v3  ;;  %275 = vmatpush.bf16.msra.mxu2 %v412_v11  ;;  %v411_v12 = vld [vmem:[#allocation8 + $0x30] sm:$0xff]  ;;  %v410_v13 = vld [vmem:[#allocation8 + $0x28] sm:$0xff]  ;;  %v409_v14 = vld [vmem:[#allocation8 + $0x20] sm:$0xff]  ;;  %vm292_vm1 = vcmp.lt.s32.totalorder %v291_v32, 4  ;;  %v297_v39 = vcvt.s32.f32 %v291_v32 }
  0x18   :  { %v408_v15 = vld [vmem:[#allocation8 + $0x18] sm:$0xff]  ;;  %v407_v16 = vld [vmem:[#allocation8 + $0x10] sm:$0xff]  ;;  %v406_v23 = vld [vmem:[#allocation8 + $0x8] sm:$0xff] }
  0x19   :  { %193 = vmatpush.bf16.msra.mxu1 %v403_v4  ;;  %v425_v17 = vld [vmem:[%s637_s2] ss:$0 sm:$0xff]  ;;  %v405_v24 = vld [vmem:[#allocation8] sm:$0xff] }
  0x1a   :  { %v426_v25 = vld [vmem:[%s639_s4] ss:$0 sm:$0xff]  ;;  %s562_s4 = smov [#allocation10]  }
  0x1b   :  { %276 = vmatpush.bf16.msra.mxu2 %v411_v12  ;;  %v427_v33 = vld [vmem:[%s641_s6] ss:$0 sm:$0xff]  ;;  %s309_s28 = sshll.u32 %s562_s4, 4  ;;  %s310_s28 = int_to_ptr.vmem [resolvable:$true] %s309_s28 }
  0x1d   :  { %194 = vmatpush.bf16.msra.mxu1 %v402_v5 }
  0x1f   :  { %277 = vmatpush.bf16.msra.mxu2 %v410_v13 }
  0x21   :  { %195 = vmatpush.bf16.msra.mxu1 %v401_v6 }
  0x23   :  { %278 = vmatpush.bf16.msra.mxu2 %v409_v14 }
  0x25   :  { %196 = vmatpush.bf16.msra.mxu1 %v400_v7 }
  0x27   :  { %279 = vmatpush.bf16.msra.mxu2 %v408_v15 }
  0x29   :  { %197 = vmatpush.bf16.msra.mxu1 %v399_v8 }
  0x2b   :  { %280 = vmatpush.bf16.msra.mxu2 %v407_v16 }
  0x2d   :  { %198 = vmatpush.bf16.msra.mxu1 %v398_v9 }
  0x2f   :  { %281 = vmatpush.bf16.msra.mxu2 %v406_v23 }
  0x31   :  { %199 = vmatpush.bf16.msra.mxu1 %v397_v10 }
  0x33   :  { %282 = vmatpush.bf16.msra.mxu2 %v405_v24 }
  0x94   :  { %v118_v18 = vpop.f32.mrf.mxu0 }
  0x95   :  { %v119_v19 = vadd.f32 %v425_v17, %v118_v18 }
  0x97   :  { %v122_v20 = vmax.f32 %v119_v19, 0.0 }
  0x99   :  { %v123_v21 = vpack.c.bf16 %v122_v20, %v122_v20 }
  0x9b   :  { %200 = vmatmul.bf16.vlgmr.msra.gmra.mxu1 %v123_v21 }
  0x9c   :  { %v120_v22 = vpop.f32.mrf.mxu0 }
 0x118   :  { %v201_v26 = vpop.f32.mrf.mxu1 }
 0x119   :  { %v202_v27 = vadd.f32 %v426_v25, %v201_v26 }
 0x11b   :  { %v205_v28 = vmax.f32 %v202_v27, 0.0 }
 0x11d   :  { %v206_v29 = vpack.c.bf16 %v205_v28, %v205_v28 }
 0x11f   :  { %283 = vmatmul.bf16.vlgmr.msra.gmra.mxu2 %v206_v29 }
 0x120   :  { %v203_v30 = vpop.f32.mrf.mxu1 }
 0x1a2   :  { %v284_v34 = vpop.f32.mrf.mxu2 }
 0x1a3   :  { %v285_v35 = vadd.f32 %v427_v33, %v284_v34 }
 0x1a5   :  { %v288_v36 = vpack.c.bf16 %v285_v35, %v285_v35  ;;  %v293_v37 = vsel %vm292_vm1, %v285_v35, -3.4028235e+38 }
 0x1a6   :  { %294 = vmax.xlane.f32.xlu0 %v293_v37 }
 0x1a7   :  { %289 = vst [vmem:[#allocation10] sm:$0xf] %v288_v36 }
 0x1a8   :  { %314 = dma.vmem_to_hbm [thread:$0]  %s310_s28, 64, %s312_s9, [#allocation4]  }
 0x1aa   :  { %v286_v38 = vpop.f32.mrf.mxu2 }
 0x219   :  { %v295_v40 = vpop.xlane.xlu0 %294 }
 0x21a   :  { %vm296_vm2 = vcmp.eq.f32.partialorder %v293_v37, %v295_v40 }
 0x21b   :  { %v298_v41 = vsel %vm296_vm2, %v297_v39, 128.0 }
 0x21c   :  { %299 = vmin.xlane.f32.xlu0 %v298_v41 }
 0x28f   :  { %v300_v42 = vpop.xlane.xlu0 %299 }
 0x290   :  { %vm413_vm3 = vcmp.lt.s32.totalorder %v300_v42, 0  ;;  %v414_v43 = vceil.f32 %v300_v42  ;;  %v415_v44 = vfloor.f32 %v300_v42 }
 0x292   :  { %v416_v45 = vsel %vm413_vm3, %v414_v43, %v415_v44 }
 0x293   :  { %v417_v46 = vcvt.f32.s32 %v416_v45 }
 0x295   :  { %303 = vst.msk [vmem:[%s643_s8] sm:$0xff] %vm302_vm4, %v417_v46 }
 0x296   :  { %554 = dma.done.wait [#allocation4], 64  }
 0x297   :  { %555 = vsyncadd [#allocation4], 4294967232 }
 0x298   :  { %323 = vsyncpa [#allocation3], 1 }
 0x299   :  { %324 = vsyncpa [#allocation6], 1 }
 0x29a   :  { %325 = vsyncpa [#allocation9], 1 }
 0x29b   :  { %326 = vsyncpa [#allocation4], 1 }

</bundles_post_ra>
